<compile_context>
chip_gen: v6e
topology: v6e:2x2x1
jax: 0.10.0
libtpu: 0.0.40
codegen_flags: <defaults>
</compile_context>

<pallas_src>
import math

import jax
import jax.numpy as jnp
import numpy as np
from jax import lax
from jax.experimental import pallas as pl
from jax.experimental.pallas import tpu as pltpu

RADIUS = 3
SIGMA = 5.0
KSIZE = 2 * RADIUS + 1  # 7


def _gaussian_taps_1d():
    """Normalized 1-D taps; their outer product equals the module's 7x7 kernel."""
    xs = np.arange(-RADIUS, RADIUS + 1, dtype=np.float64)
    g = np.exp(-(xs * xs) / (2.0 * SIGMA * SIGMA))
    g = g / g.sum()
    return tuple(float(v) for v in g)


TAPS = _gaussian_taps_1d()


def gaussian_template() -> np.ndarray:
    """Replicates GaussianSmoothing.template(): normalized 7x7 Gaussian."""
    side = KSIZE
    result = np.zeros((side, side), dtype=np.float64)
    norm = 1.0 / (2.0 * 3.1415926 * SIGMA * SIGMA)
    for i in range(side):
        for j in range(side):
            xx = i - RADIUS
            yy = j - RADIUS
            result[i, j] = norm * math.exp(-(xx * xx + yy * yy) / (2.0 * SIGMA * SIGMA))
    return (result / result.sum()).astype(np.float32)


def _smoothing_kernel(x_ref, o_ref, xpad_ref, tpad_ref):
    """Separable 7x7 Gaussian blur on a (BC, H, W) block of images.

    x_ref:    (BC, H, W)            input block (one DMA per step, no HBM pad pass)
    o_ref:    (BC, H, W)            output block
    xpad_ref: (BC, H + 2R, W) VMEM  H-halo'd staging buffer (zero halo rows)
    tpad_ref: (BC, H, W + 2R) VMEM  W-halo'd vertical-pass result (zero halo cols)
    """
    BC, H, W = o_ref.shape

    # --- stage the H-padded input (zero halo rows) ---
    xpad_ref[:, :RADIUS, :] = jnp.zeros((BC, RADIUS, W), jnp.float32)
    xpad_ref[:, RADIUS + H:, :] = jnp.zeros((BC, RADIUS, W), jnp.float32)
    xpad_ref[:, RADIUS:RADIUS + H, :] = x_ref[...].astype(jnp.float32)

    # --- vertical 7-tap pass (sublane-axis shifts), f32 accumulation ---
    acc = TAPS[0] * xpad_ref[:, 0:H, :]
    for i in range(1, KSIZE):
        acc = acc + TAPS[i] * xpad_ref[:, i:i + H, :]

    # --- stage the W-padded intermediate (zero halo columns) ---
    tpad_ref[:, :, :RADIUS] = jnp.zeros((BC, H, RADIUS), jnp.float32)
    tpad_ref[:, :, RADIUS + W:] = jnp.zeros((BC, H, RADIUS), jnp.float32)
    tpad_ref[:, :, RADIUS:RADIUS + W] = acc

    # --- horizontal 7-tap pass (lane-axis shifts) ---
    out = TAPS[0] * tpad_ref[:, :, 0:W]
    for j in range(1, KSIZE):
        out = out + TAPS[j] * tpad_ref[:, :, j:j + W]

    o_ref[...] = out.astype(o_ref.dtype)


def _pick_block_channels(nc: int, h: int, w: int, budget_bytes: int = 8 << 20) -> int:
    """Largest divisor of nc that fits a VMEM budget, keeping >=2 grid steps
    where possible (so a parallel grid axis can shard across v7x's 2 TCs)."""
    hp, wp = h + 2 * RADIUS, w + 2 * RADIUS
    # double-buffered in/out blocks + the two single-buffered f32 scratches
    per_image = 4 * (2 * 2 * h * w + hp * w + h * wp)
    cap = max(1, budget_bytes // per_image)
    best = 1
    for bc in range(1, nc + 1):
        if nc % bc != 0 or bc > cap:
            continue
        if nc // bc >= 2 or nc < 2:
            best = bc
    return best


def gaussian_smoothing(x: jax.Array) -> jax.Array:
    """Depthwise 7x7 Gaussian blur, padding=3, groups=channels. NCHW in/out."""
    N, C, H, W = x.shape
    NC = N * C
    Hp, Wp = H + 2 * RADIUS, W + 2 * RADIUS

    xf = x.reshape(NC, H, W)  # contiguous leading-dim merge: free metadata reshape
    BC = _pick_block_channels(NC, H, W)
    grid = (NC // BC,)

    # VMEM budget: keep within v7x's smaller scoped VMEM while leaving room
    # for 2-deep pipelining.
    block_bytes = 4 * BC * (2 * 2 * H * W + Hp * W + H * Wp)
    vmem_limit = int(min(48 << 20, max(32 << 20, 2 * block_bytes)))

    # TODO(synk): for very large images, add a row-tile grid axis with a 6-row
    # halo (overlapping DMA) instead of whole-image blocks, to stay inside
    # v7x's 64 MiB VMEM.
    out = pl.pallas_call(
        _smoothing_kernel,
        out_shape=jax.ShapeDtypeStruct((NC, H, W), x.dtype),
        grid=grid,
        in_specs=[pl.BlockSpec((BC, H, W), lambda b: (b, 0, 0))],
        out_specs=pl.BlockSpec((BC, H, W), lambda b: (b, 0, 0)),
        scratch_shapes=[
            pltpu.VMEM((BC, Hp, W), jnp.float32),
            pltpu.VMEM((BC, H, Wp), jnp.float32),
        ],
        compiler_params=pltpu.CompilerParams(
            dimension_semantics=("parallel",),
            vmem_limit_bytes=vmem_limit,
        ),
    )(xf)
    return out.reshape(N, C, H, W)


def _reference(x: jax.Array) -> jax.Array:
    """Plain-JAX depthwise conv with the exact PyTorch 7x7 weight."""
    C = x.shape[1]
    w2d = jnp.asarray(gaussian_template())                   # (7, 7)
    w = jnp.tile(w2d[None, None, :, :], (C, 1, 1, 1))         # (C, 1, 7, 7) OIHW
    return lax.conv_general_dilated(
        x, w,
        window_strides=(1, 1),
        padding=((RADIUS, RADIUS), (RADIUS, RADIUS)),
        dimension_numbers=("NCHW", "OIHW", "NCHW"),
        feature_group_count=C,
    )


if __name__ == "__main__":
    N, C, H, W = 2, 4, 16, 16
    key = jax.random.PRNGKey(0)
    x = jax.random.normal(key, (N, C, H, W), dtype=jnp.float32)

    out = gaussian_smoothing(x)
    out = jax.block_until_ready(out)

    ref = jax.block_until_ready(_reference(x))
    np.testing.assert_allclose(np.asarray(out), np.asarray(ref), rtol=1e-5, atol=1e-5)

    print("KERNEL_OK")
</pallas_src>

<mosaic_0001>
module attributes {stable_mosaic.version = 11 : i64} {
  func.func @_smoothing_kernel(%arg0: i32, %arg1: memref<4x16x16xf32, #tpu.memory_space<vmem>>, %arg2: memref<4x16x16xf32, #tpu.memory_space<vmem>>, %arg3: memref<4x22x16xf32, #tpu.memory_space<vmem>>, %arg4: memref<4x16x22xf32, #tpu.memory_space<vmem>>) attributes {dimension_semantics = [#tpu.dimension_semantics<parallel>], iteration_bounds = array<i64: 2>, scalar_prefetch = 0 : i64, scratch_operands = 2 : i64, tpu.core_type = #tpu.core_type<tc>, window_params = [{transform_indices = @transform_0, window_bounds = array<i64: 4, 16, 16>}, {transform_indices = @transform_1, window_bounds = array<i64: 4, 16, 16>}]} {
    %cst = arith.constant 0.000000e+00 : f32
    %0 = vector.broadcast %cst : f32 to vector<4x3x16xf32>
    %c0 = arith.constant 0 : index
    %c0_0 = arith.constant 0 : index
    %c0_1 = arith.constant 0 : index
    %1 = vector.load %arg3[%c0, %c0_0, %c0_1] : memref<4x22x16xf32, #tpu.memory_space<vmem>>, vector<4x3x16xf32>
    tpu.vector_store %arg3[%c0, %c0_0, %c0_1], %0 {strides = array<i32>} : memref<4x22x16xf32, #tpu.memory_space<vmem>>, vector<4x3x16xf32>,
    %cst_2 = arith.constant 0.000000e+00 : f32
    %2 = vector.broadcast %cst_2 : f32 to vector<4x3x16xf32>
    %c0_3 = arith.constant 0 : index
    %c19 = arith.constant 19 : index
    %c0_4 = arith.constant 0 : index
    %3 = vector.load %arg3[%c0_3, %c19, %c0_4] : memref<4x22x16xf32, #tpu.memory_space<vmem>>, vector<4x3x16xf32>
    tpu.vector_store %arg3[%c0_3, %c19, %c0_4], %2 {strides = array<i32>} : memref<4x22x16xf32, #tpu.memory_space<vmem>>, vector<4x3x16xf32>,
    %c0_5 = arith.constant 0 : index
    %c0_6 = arith.constant 0 : index
    %c0_7 = arith.constant 0 : index
    %4 = vector.load %arg1[%c0_5, %c0_6, %c0_7] : memref<4x16x16xf32, #tpu.memory_space<vmem>>, vector<4x16x16xf32>
    %c0_8 = arith.constant 0 : index
    %c3 = arith.constant 3 : index
    %c0_9 = arith.constant 0 : index
    %5 = vector.load %arg3[%c0_8, %c3, %c0_9] : memref<4x22x16xf32, #tpu.memory_space<vmem>>, vector<4x16x16xf32>
    tpu.vector_store %arg3[%c0_8, %c3, %c0_9], %4 {strides = array<i32>} : memref<4x22x16xf32, #tpu.memory_space<vmem>>, vector<4x16x16xf32>,
    %c0_10 = arith.constant 0 : index
    %c0_11 = arith.constant 0 : index
    %c0_12 = arith.constant 0 : index
    %6 = vector.load %arg3[%c0_10, %c0_11, %c0_12] : memref<4x22x16xf32, #tpu.memory_space<vmem>>, vector<4x16x16xf32>
    %cst_13 = arith.constant 0.128956035 : f32
    %7 = vector.broadcast %cst_13 : f32 to vector<4x16x16xf32>
    %8 = arith.mulf %7, %6 : vector<4x16x16xf32>
    %c0_14 = arith.constant 0 : index
    %c1 = arith.constant 1 : index
    %c0_15 = arith.constant 0 : index
    %9 = vector.load %arg3[%c0_14, %c1, %c0_15] : memref<4x22x16xf32, #tpu.memory_space<vmem>>, vector<4x16x16xf32>
    %cst_16 = arith.constant 0.142518461 : f32
    %10 = vector.broadcast %cst_16 : f32 to vector<4x16x16xf32>
    %11 = arith.mulf %10, %9 : vector<4x16x16xf32>
    %12 = arith.addf %8, %11 : vector<4x16x16xf32>
    %c0_17 = arith.constant 0 : index
    %c2 = arith.constant 2 : index
    %c0_18 = arith.constant 0 : index
    %13 = vector.load %arg3[%c0_17, %c2, %c0_18] : memref<4x22x16xf32, #tpu.memory_space<vmem>>, vector<4x16x16xf32>
    %cst_19 = arith.constant 0.151331306 : f32
    %14 = vector.broadcast %cst_19 : f32 to vector<4x16x16xf32>
    %15 = arith.mulf %14, %13 : vector<4x16x16xf32>
    %16 = arith.addf %12, %15 : vector<4x16x16xf32>
    %c0_20 = arith.constant 0 : index
    %c3_21 = arith.constant 3 : index
    %c0_22 = arith.constant 0 : index
    %17 = vector.load %arg3[%c0_20, %c3_21, %c0_22] : memref<4x22x16xf32, #tpu.memory_space<vmem>>, vector<4x16x16xf32>
    %cst_23 = arith.constant 0.154388398 : f32
    %18 = vector.broadcast %cst_23 : f32 to vector<4x16x16xf32>
    %19 = arith.mulf %18, %17 : vector<4x16x16xf32>
    %20 = arith.addf %16, %19 : vector<4x16x16xf32>
    %c0_24 = arith.constant 0 : index
    %c4 = arith.constant 4 : index
    %c0_25 = arith.constant 0 : index
    %21 = vector.load %arg3[%c0_24, %c4, %c0_25] : memref<4x22x16xf32, #tpu.memory_space<vmem>>, vector<4x16x16xf32>
    %cst_26 = arith.constant 0.151331306 : f32
    %22 = vector.broadcast %cst_26 : f32 to vector<4x16x16xf32>
    %23 = arith.mulf %22, %21 : vector<4x16x16xf32>
    %24 = arith.addf %20, %23 : vector<4x16x16xf32>
    %c0_27 = arith.constant 0 : index
    %c5 = arith.constant 5 : index
    %c0_28 = arith.constant 0 : index
    %25 = vector.load %arg3[%c0_27, %c5, %c0_28] : memref<4x22x16xf32, #tpu.memory_space<vmem>>, vector<4x16x16xf32>
    %cst_29 = arith.constant 0.142518461 : f32
    %26 = vector.broadcast %cst_29 : f32 to vector<4x16x16xf32>
    %27 = arith.mulf %26, %25 : vector<4x16x16xf32>
    %28 = arith.addf %24, %27 : vector<4x16x16xf32>
    %c0_30 = arith.constant 0 : index
    %c6 = arith.constant 6 : index
    %c0_31 = arith.constant 0 : index
    %29 = vector.load %arg3[%c0_30, %c6, %c0_31] : memref<4x22x16xf32, #tpu.memory_space<vmem>>, vector<4x16x16xf32>
    %cst_32 = arith.constant 0.128956035 : f32
    %30 = vector.broadcast %cst_32 : f32 to vector<4x16x16xf32>
    %31 = arith.mulf %30, %29 : vector<4x16x16xf32>
    %32 = arith.addf %28, %31 : vector<4x16x16xf32>
    %cst_33 = arith.constant 0.000000e+00 : f32
    %33 = vector.broadcast %cst_33 : f32 to vector<4x16x3xf32>
    %c0_34 = arith.constant 0 : index
    %c0_35 = arith.constant 0 : index
    %c0_36 = arith.constant 0 : index
    %34 = vector.load %arg4[%c0_34, %c0_35, %c0_36] : memref<4x16x22xf32, #tpu.memory_space<vmem>>, vector<4x16x3xf32>
    tpu.vector_store %arg4[%c0_34, %c0_35, %c0_36], %33 {strides = array<i32>} : memref<4x16x22xf32, #tpu.memory_space<vmem>>, vector<4x16x3xf32>,
    %cst_37 = arith.constant 0.000000e+00 : f32
    %35 = vector.broadcast %cst_37 : f32 to vector<4x16x3xf32>
    %c0_38 = arith.constant 0 : index
    %c0_39 = arith.constant 0 : index
    %c19_40 = arith.constant 19 : index
    %36 = vector.load %arg4[%c0_38, %c0_39, %c19_40] : memref<4x16x22xf32, #tpu.memory_space<vmem>>, vector<4x16x3xf32>
    tpu.vector_store %arg4[%c0_38, %c0_39, %c19_40], %35 {strides = array<i32>} : memref<4x16x22xf32, #tpu.memory_space<vmem>>, vector<4x16x3xf32>,
    %c0_41 = arith.constant 0 : index
    %c0_42 = arith.constant 0 : index
    %c3_43 = arith.constant 3 : index
    %37 = vector.load %arg4[%c0_41, %c0_42, %c3_43] : memref<4x16x22xf32, #tpu.memory_space<vmem>>, vector<4x16x16xf32>
    tpu.vector_store %arg4[%c0_41, %c0_42, %c3_43], %32 {strides = array<i32>} : memref<4x16x22xf32, #tpu.memory_space<vmem>>, vector<4x16x16xf32>,
    %c0_44 = arith.constant 0 : index
    %c0_45 = arith.constant 0 : index
    %c0_46 = arith.constant 0 : index
    %38 = vector.load %arg4[%c0_44, %c0_45, %c0_46] : memref<4x16x22xf32, #tpu.memory_space<vmem>>, vector<4x16x16xf32>
    %cst_47 = arith.constant 0.128956035 : f32
    %39 = vector.broadcast %cst_47 : f32 to vector<4x16x16xf32>
    %40 = arith.mulf %39, %38 : vector<4x16x16xf32>
    %c0_48 = arith.constant 0 : index
    %c0_49 = arith.constant 0 : index
    %c1_50 = arith.constant 1 : index
    %41 = vector.load %arg4[%c0_48, %c0_49, %c1_50] : memref<4x16x22xf32, #tpu.memory_space<vmem>>, vector<4x16x16xf32>
    %cst_51 = arith.constant 0.142518461 : f32
    %42 = vector.broadcast %cst_51 : f32 to vector<4x16x16xf32>
    %43 = arith.mulf %42, %41 : vector<4x16x16xf32>
    %44 = arith.addf %40, %43 : vector<4x16x16xf32>
    %c0_52 = arith.constant 0 : index
    %c0_53 = arith.constant 0 : index
    %c2_54 = arith.constant 2 : index
    %45 = vector.load %arg4[%c0_52, %c0_53, %c2_54] : memref<4x16x22xf32, #tpu.memory_space<vmem>>, vector<4x16x16xf32>
    %cst_55 = arith.constant 0.151331306 : f32
    %46 = vector.broadcast %cst_55 : f32 to vector<4x16x16xf32>
    %47 = arith.mulf %46, %45 : vector<4x16x16xf32>
    %48 = arith.addf %44, %47 : vector<4x16x16xf32>
    %c0_56 = arith.constant 0 : index
    %c0_57 = arith.constant 0 : index
    %c3_58 = arith.constant 3 : index
    %49 = vector.load %arg4[%c0_56, %c0_57, %c3_58] : memref<4x16x22xf32, #tpu.memory_space<vmem>>, vector<4x16x16xf32>
    %cst_59 = arith.constant 0.154388398 : f32
    %50 = vector.broadcast %cst_59 : f32 to vector<4x16x16xf32>
    %51 = arith.mulf %50, %49 : vector<4x16x16xf32>
    %52 = arith.addf %48, %51 : vector<4x16x16xf32>
    %c0_60 = arith.constant 0 : index
    %c0_61 = arith.constant 0 : index
    %c4_62 = arith.constant 4 : index
    %53 = vector.load %arg4[%c0_60, %c0_61, %c4_62] : memref<4x16x22xf32, #tpu.memory_space<vmem>>, vector<4x16x16xf32>
    %cst_63 = arith.constant 0.151331306 : f32
    %54 = vector.broadcast %cst_63 : f32 to vector<4x16x16xf32>
    %55 = arith.mulf %54, %53 : vector<4x16x16xf32>
    %56 = arith.addf %52, %55 : vector<4x16x16xf32>
    %c0_64 = arith.constant 0 : index
    %c0_65 = arith.constant 0 : index
    %c5_66 = arith.constant 5 : index
    %57 = vector.load %arg4[%c0_64, %c0_65, %c5_66] : memref<4x16x22xf32, #tpu.memory_space<vmem>>, vector<4x16x16xf32>
    %cst_67 = arith.constant 0.142518461 : f32
    %58 = vector.broadcast %cst_67 : f32 to vector<4x16x16xf32>
    %59 = arith.mulf %58, %57 : vector<4x16x16xf32>
    %60 = arith.addf %56, %59 : vector<4x16x16xf32>
    %c0_68 = arith.constant 0 : index
    %c0_69 = arith.constant 0 : index
    %c6_70 = arith.constant 6 : index
    %61 = vector.load %arg4[%c0_68, %c0_69, %c6_70] : memref<4x16x22xf32, #tpu.memory_space<vmem>>, vector<4x16x16xf32>
    %cst_71 = arith.constant 0.128956035 : f32
    %62 = vector.broadcast %cst_71 : f32 to vector<4x16x16xf32>
    %63 = arith.mulf %62, %61 : vector<4x16x16xf32>
    %64 = arith.addf %60, %63 : vector<4x16x16xf32>
    %c0_72 = arith.constant 0 : index
    %c0_73 = arith.constant 0 : index
    %c0_74 = arith.constant 0 : index
    %65 = vector.load %arg2[%c0_72, %c0_73, %c0_74] : memref<4x16x16xf32, #tpu.memory_space<vmem>>, vector<4x16x16xf32>
    tpu.vector_store %arg2[%c0_72, %c0_73, %c0_74], %64 {strides = array<i32>} : memref<4x16x16xf32, #tpu.memory_space<vmem>>, vector<4x16x16xf32>,
    return
  }
  func.func @transform_0(%arg0: i32) -> (i32, i32, i32) {
    %c0_i32 = arith.constant 0 : i32
    %c0_i32_0 = arith.constant 0 : i32
    %c0_i32_1 = arith.constant 0 : i32
    return %arg0, %c0_i32, %c0_i32_0 : i32, i32, i32
  }
  func.func @transform_1(%arg0: i32) -> (i32, i32, i32) {
    %c0_i32 = arith.constant 0 : i32
    %c0_i32_0 = arith.constant 0 : i32
    %c0_i32_1 = arith.constant 0 : i32
    return %arg0, %c0_i32, %c0_i32_0 : i32, i32, i32
  }
}

</mosaic_0001>

<bundles_post_ra>
// kernel: tpu_custom_call.1
= control target key start
LH: loop header
LB: loop body
LE: loop exit
PB: predicated region body
PF: predicated region fallthrough
CT: control target
= control target key end

     0   :  { %6 = vsyncpa [#allocation5], 0  ;;  %s1233_s0 = inlined_call_operand.hbm [shape: f32[8,16,16], index: 0, kind: input, shape index: {}]   ;;  %s1234_s1 = inlined_call_operand.hbm [shape: f32[8,16,16], index: 1, kind: output, shape index: {}]  }
   0x1   :  { %8 = vsyncpa [#allocation5 + $0x1], 0 }
   0x2   :  { %9 = vsyncpa [#allocation6], 0 }
   0x3   :  { %11 = vsyncpa [#allocation6 + $0x1], 0  ;;  %s939_s6 = smov 0   ;;  %s941_s7 = smov 0  }
   0x4   :  { %s943_s8 = smov 0   ;;  %s945_s9 = smov 0  }
   0x5 LB: > { %s960_s10 = sadd.s32 4294967295, %s913_s9   ;;  %s743_s11 = sadd.s32 4294967294, %s913_s9   ;;  %s913_s9 = sphi %s945_s9, %s1249_s9   ;;  %s909_s8 = sphi %s943_s8, %s1248_s8   ;;  %s905_s7 = sphi %s941_s7, %s1247_s7   ;;  %s901_s6 = sphi %s939_s6, %s1246_s6  }
   0x6   : > { %s964_s12 = sadd.s32 1, %s913_s9   ;;  %s24_s13 = sadd.s32 1, %s909_s8 }
   0x7   : > { %s21_s14 = ssub.s32 %s913_s9, %s964_s12  ;;  %p31_p0 = scmp.ne.s32.totalorder %s909_s8, %s905_s7 }
   0x8   : > { %p22_p1 = scmp.eq.s32.totalorder %s21_s14, 0  ;;  %p32_p2 = scmp.eq.s32.totalorder %s913_s9, 0 }
   0x9   : > { %p37_p3 = scmp.ne.s32.totalorder %s905_s7, %s901_s6  ;;  %p38_p4 = scmp.eq.s32.totalorder %s960_s10, 0 }
   0xa   : > { %s976_s15 = scalar_select %p22_p1, %s909_s8, %s24_s13  }
   0xb   : > { %p978_p5 = por %p32_p2, %p31_p0  ;;  %p982_p6 = por %p38_p4, %p37_p3 }
   0xc   : > { %p61_p7 = scmp.eq.s32.totalorder %s960_s10, 1  ;;  %p67_p8 = scmp.eq.s32.totalorder %s743_s11, 1 }
   0xd   : > { %s1238_s17 = scalar_select %p982_p6, 1, 0 }
   0xe   : > { %p775_p10 = scmp.lt.s32.totalorder %s913_s9, 2  ;;  %p989_p11 = por %p61_p7, %p31_p0 }
   0xf   : > { %p993_p12 = por %p67_p8, %p37_p3  ;;  %s87_s20 = sand.u32 1, %s909_s8  }
  0x10   : > { %s1239_s18 = scalar_select %p989_p11, 1, 0 }
  0x11   : > { %s1240_s19 = scalar_select %p993_p12, 1, 0 }
  0x12   : > { %s760_s21 = sshll.u32 %s913_s9, 10  ;;  %s746_s22 = sshll.u32 %s87_s20, 6 }
  0x13   : > { %s1002_s25 = scalar_lea.hbm %s1233_s0, %s760_s21  ;;  %s91_s26 = scalar_lea.vmem [#allocation4], %s746_s22 }
  0x14   : > { %s99_s27 = sshll.u32 %s91_s26, 4  ;;  %p1006_p13 = pnand %p775_p10, %p978_p5  ;;  %s1010_s27 = int_to_ptr.vmem [resolvable:$true] %s99_s27 }
  0x15   : > { %s1012_s29 = scalar_lea.sflag [#allocation5], %s87_s20  ;;  %s821_s30 = scalar_lea.hbm %s1002_s25, 1024 }
  0x16   : > { %p822_p0 = scmp.ne.s32.totalorder %s1002_s25, %s821_s30  ;;  %p823_p1 = pneg %p1006_p13 }
  0x17   : > { %s826_s4 = scalar_lea.hbm %s1233_s0, 2048  ;;  %p827_p4 = scmp.lt.s32.totalorder %s1002_s25, %s1233_s0 }
  0x18   : > { %p824_p2 = pnand %p823_p1, %p822_p0  ;;  %p828_p5 = scmp.lt.s32.totalorder %s826_s4, %s821_s30 }
  0x1a   : > { %p825_p3 = pneg %p824_p2  ;;  %p829_p7 = por %p828_p5, %p827_p4 }
  0x1c   : > { %p830_p8 = pnand %p829_p7, %p825_p3 }
  0x1e   : > { %833 = shalt.err (!%p830_p8)
}
  0x1f   : > { %s834_s13 = scalar_lea.vmem %s1010_s27, 1024  ;;  %s915_s14 = smov [#allocation4]  }
  0x20   : > { %p835_p10 = scmp.ne.s32.totalorder %s1010_s27, %s834_s13  ;;  %s839_s16 = sshll.u32 %s915_s14, 4  ;;  %s840_s16 = int_to_ptr.vmem [resolvable:$false] %s839_s16 }
  0x21   : > { %s841_s20 = scalar_lea.vmem %s840_s16, 2048  ;;  %p842_p2 = scmp.lt.s32.totalorder %s1010_s27, %s840_s16 }
  0x22   : > { %p837_p9 = pnand %p835_p10, %p823_p1  ;;  %p843_p12 = scmp.lt.s32.totalorder %s841_s20, %s834_s13 }
  0x24   : > { %p838_p0 = pneg %p837_p9  ;;  %p844_p11 = por %p843_p12, %p842_p2 }
  0x26   : > { %p845_p6 = pnand %p844_p11, %p838_p0 }
  0x28   : > { %848 = shalt.err (!%p845_p6)
}
  0x29   : > { %s916_s21 = smov 128   ;;  %s917_s22 = smov 8  }
  0x2a   : > { %770 = dma.hbm_to_vmem [thread:$0]  (!%p1006_p13), %s1002_s25, 1024, %s1010_s27, %s1012_s29, %s916_s21, %s916_s21, %s917_s22  }
  0x2b   : > { %p750_p9 = scmp.ge.s32.totalorder %s913_s9, 1  ;;  %p107_p1 = scmp.lt.s32.totalorder %s913_s9, 3 }
  0x2d   : > { %p108_p3 = pnand %p750_p9, %p107_p1 }
  0x2e   : > { %s1036_s23 = sand.u32 (!%p108_p3), 1, %s905_s7   ;;  %p1242_p6 = scmp.ne.s32.totalorder (!%p108_p3), %s1238_s17, 0 }
  0x2f   : > { %111 = sbr.rel (%p108_p3) target bundleno = 449 (0x1c1), region = 24  ;;  %s751_s24 = sshll.u32 (!%p108_p3), %s1036_s23, 6 }
  0x30   : > { %s114_s26 = scalar_lea.sflag (!%p108_p3), [#allocation5], %s1036_s23  ;;  %s1042_s30 = scalar_lea.vmem (!%p108_p3), [#allocation4], %s751_s24 }
  0x34   : > { %892 = dma.done.wait (%p1242_p6), %s114_s26, 1024  }
  0x35   : > { %894 = vsyncadd (%p1242_p6), %s114_s26, 4294966272  ;;  %vm138_vm0 = vcmask 124928   ;;  %vm324_vm1 = vcmask 23552   ;;  %v918_v0 = vmov 0.0   ;;  %vm333_vm2 = vcmask 179352   ;;  %v147_v1 = vld [vmem:[%s1042_s30] sm:$0xff] }
  0x36   : > { %139 = vst.msk [vmem:[#allocation2] sm:$0x7] %vm138_vm0, %v918_v0  ;;  %140 = vst.msk [vmem:[#allocation2 + $0x18] sm:$0x7] %vm138_vm0, %v918_v0  ;;  %vm155_vm3 = vcmask 130048   ;;  %v148_v2 = vld [vmem:[%s1042_s30 + $0x8] sm:$0xff] }
  0x37   : > { %141 = vst.msk [vmem:[#allocation2 + $0x30] sm:$0x7] %vm138_vm0, %v918_v0  ;;  %142 = vst.msk [vmem:[#allocation2 + $0x48] sm:$0x7] %vm138_vm0, %v918_v0  ;;  %v149_v3 = vld [vmem:[%s1042_s30 + $0x10] sm:$0xff]  ;;  %v150_v4 = vld [vmem:[%s1042_s30 + $0x18] sm:$0xff] }
  0x38   : > { %143 = vst.msk [vmem:[#allocation2 + $0x13] sm:$0x7] %vm138_vm0, %v918_v0  ;;  %144 = vst.msk [vmem:[#allocation2 + $0x2b] sm:$0x7] %vm138_vm0, %v918_v0  ;;  %v151_v5 = vld [vmem:[%s1042_s30 + $0x20] sm:$0xff]  ;;  %v152_v6 = vld [vmem:[%s1042_s30 + $0x28] sm:$0xff] }
  0x39   : > { %145 = vst.msk [vmem:[#allocation2 + $0x43] sm:$0x7] %vm138_vm0, %v918_v0  ;;  %146 = vst.msk [vmem:[#allocation2 + $0x5b] sm:$0x7] %vm138_vm0, %v918_v0  ;;  %v153_v7 = vld [vmem:[%s1042_s30 + $0x30] sm:$0xff]  ;;  %v154_v8 = vld [vmem:[%s1042_s30 + $0x38] sm:$0xff] }
  0x3a   : > { %325 = vst.msk [vmem:[#allocation3] sm:$0xff] %vm324_vm1, %v918_v0  ;;  %326 = vst.msk [vmem:[#allocation3 + $0x8] sm:$0xff] %vm324_vm1, %v918_v0  ;;  %s919_s17 = smov 3   ;;  %vm374_vm4 = vcmask 154648   ;;  %s920_s25 = smov 127  }
  0x3b   : > { %327 = vst.msk [vmem:[#allocation3 + $0x10] sm:$0xff] %vm324_vm1, %v918_v0  ;;  %328 = vst.msk [vmem:[#allocation3 + $0x18] sm:$0xff] %vm324_vm1, %v918_v0  ;;  %s921_s27 = smov 126   ;;  %s922_s28 = smov 125  }
  0x3c   : > { %329 = vst.msk [vmem:[#allocation3 + $0x20] sm:$0xff] %vm324_vm1, %v918_v0  ;;  %330 = vst.msk [vmem:[#allocation3 + $0x28] sm:$0xff] %vm324_vm1, %v918_v0  ;;  %s923_s29 = smov 124   ;;  %s924_s2 = smov 123  }
  0x3d   : > { %331 = vst.msk [vmem:[#allocation3 + $0x30] sm:$0xff] %vm324_vm1, %v918_v0  ;;  %332 = vst.msk [vmem:[#allocation3 + $0x38] sm:$0xff] %vm324_vm1, %v918_v0  ;;  %s925_s3 = smov 122   ;;  %s1164_s4 = scalar_lea.vmem [#allocation7], %s751_s24 }
  0x3e   : > { %334 = vst.msk [vmem:[#allocation3] sm:$0xff] %vm333_vm2, %v918_v0  ;;  %336 = vst.msk [vmem:[#allocation3 + $0x10] sm:$0xff] %vm333_vm2, %v918_v0  ;;  %s762_s5 = sshll.u32 %s960_s10, 10  ;;  %s670_s11 = sshll.u32 %s1164_s4, 4  ;;  %s1188_s11 = int_to_ptr.vmem [resolvable:$true] %s670_s11 }
  0x3f   : > { %335 = vst.msk [vmem:[#allocation3 + $0x8] sm:$0xff] %vm333_vm2, %v918_v0  ;;  %337 = vst.msk [vmem:[#allocation3 + $0x18] sm:$0xff] %vm333_vm2, %v918_v0  ;;  %s1186_s16 = scalar_lea.hbm %s1234_s1, %s762_s5  ;;  %s656_s10 = scalar_lea.sflag [#allocation6], %s1036_s23 }
  0x40   : > { %338 = vst.msk [vmem:[#allocation3 + $0x20] sm:$0xff] %vm333_vm2, %v918_v0  ;;  %339 = vst.msk [vmem:[#allocation3 + $0x28] sm:$0xff] %vm333_vm2, %v918_v0  ;;  %s849_s20 = scalar_lea.vmem %s1188_s11, 1024  ;;  %p1243_p12 = scmp.ne.s32.totalorder %s1239_s18, 0 }
  0x41   : > { %340 = vst.msk [vmem:[#allocation3 + $0x30] sm:$0xff] %vm333_vm2, %v918_v0  ;;  %341 = vst.msk [vmem:[#allocation3 + $0x38] sm:$0xff] %vm333_vm2, %v918_v0  ;;  %p850_p11 = scmp.ne.s32.totalorder %s1188_s11, %s849_s20  ;;  %s926_s21 = smov [#allocation7]  }
  0x42   : > { %156 = vst.msk [vmem:[#allocation2 + $0x3] sm:$0xff] %vm155_vm3, %v147_v1  ;;  %157 = vst.msk [vmem:[#allocation2 + $0xb] sm:$0xff] %vm155_vm3, %v148_v2  ;;  %s853_s22 = sshll.u32 %s926_s21, 4  ;;  %s854_s22 = int_to_ptr.vmem [resolvable:$false] %s853_s22 }
  0x43   : > { %158 = vst.msk [vmem:[#allocation2 + $0x1b] sm:$0xff] %vm155_vm3, %v149_v3  ;;  %159 = vst.msk [vmem:[#allocation2 + $0x23] sm:$0xff] %vm155_vm3, %v150_v4  ;;  %p851_p13 = pnand %p850_p11, %p1243_p12  ;;  %s855_s24 = scalar_lea.vmem %s854_s22, 2048 }
  0x44   : > { %160 = vst.msk [vmem:[#allocation2 + $0x33] sm:$0xff] %vm155_vm3, %v151_v5  ;;  %161 = vst.msk [vmem:[#allocation2 + $0x3b] sm:$0xff] %vm155_vm3, %v152_v6  ;;  %p856_p5 = scmp.lt.s32.totalorder %s1188_s11, %s854_s22  ;;  %p857_p7 = scmp.lt.s32.totalorder %s855_s24, %s849_s20 }
  0x45   : > { %162 = vst.msk [vmem:[#allocation2 + $0x4b] sm:$0xff] %vm155_vm3, %v153_v7  ;;  %163 = vst.msk [vmem:[#allocation2 + $0x53] sm:$0xff] %vm155_vm3, %v154_v8  ;;  %p852_p4 = pneg %p851_p13 }
  0x46   : > { %p858_p8 = por %p857_p7, %p856_p5 }
  0x48   : > { %p859_p10 = pnand %p858_p8, %p852_p4 }
  0x49   : > { %v164_v9 = vld [vmem:[#allocation2] sm:$0xff]  ;;  %v165_v41 = vld [vmem:[#allocation2 + $0x8] sm:$0xff] }
  0x4a   : > { %v180_v10 = vld [vmem:[#allocation2 + $0x1] sm:$0xff]  ;;  %v172_v12 = vmul.f32 0.12895603, %v164_v9  ;;  %v166_v21 = vld [vmem:[#allocation2 + $0x18] sm:$0xff]  ;;  %v181_v42 = vld [vmem:[#allocation2 + $0x9] sm:$0xff] }
  0x4b   : > { %v204_v11 = vld [vmem:[#allocation2 + $0x2] sm:$0xff]  ;;  %v188_v13 = vmul.f32 0.14251846, %v180_v10  ;;  %v182_v22 = vld [vmem:[#allocation2 + $0x19] sm:$0xff]  ;;  %v174_v25 = vmul.f32 0.12895603, %v166_v21 }
  0x4c   : > { %v212_v14 = vmul.f32 0.1513313, %v204_v11  ;;  %v228_v15 = vld [vmem:[#allocation2 + $0x3] sm:$0xff]  ;;  %v190_v26 = vmul.f32 0.14251846, %v182_v22  ;;  %v206_v28 = vld [vmem:[#allocation2 + $0x1a] sm:$0xff] }
  0x4d   : > { %v252_v16 = vld [vmem:[#allocation2 + $0x4] sm:$0xff]  ;;  %v196_v17 = vadd.f32 %v188_v13, %v172_v12  ;;  %v236_v18 = vmul.f32 0.1543884, %v228_v15  ;;  %v230_v29 = vld [vmem:[#allocation2 + $0x1b] sm:$0xff]  ;;  %v214_v33 = vmul.f32 0.1513313, %v206_v28 }
  0x4e   : > { %v276_v19 = vld [vmem:[#allocation2 + $0x5] sm:$0xff]  ;;  %v260_v20 = vmul.f32 0.1513313, %v252_v16  ;;  %v254_v30 = vld [vmem:[#allocation2 + $0x1c] sm:$0xff]  ;;  %v198_v32 = vadd.f32 %v190_v26, %v174_v25  ;;  %v238_v34 = vmul.f32 0.1543884, %v230_v29 }
  0x4f   : > { %v220_v23 = vadd.f32 %v212_v14, %v196_v17  ;;  %v300_v24 = vld [vmem:[#allocation2 + $0x6] sm:$0xff]  ;;  %v284_v27 = vmul.f32 0.14251846, %v276_v19  ;;  %v278_v36 = vld [vmem:[#allocation2 + $0x1d] sm:$0xff]  ;;  %v262_v40 = vmul.f32 0.1513313, %v254_v30 }
  0x50   : > { %v308_v35 = vmul.f32 0.12895603, %v300_v24  ;;  %v302_v37 = vld [vmem:[#allocation2 + $0x1e] sm:$0xff]  ;;  %v222_v39 = vadd.f32 %v214_v33, %v198_v32  ;;  %v205_v43 = vld [vmem:[#allocation2 + $0xa] sm:$0xff]  ;;  %v173_v44 = vmul.f32 0.12895603, %v165_v41 }
  0x51   : > { %v244_v31 = vadd.f32 %v236_v18, %v220_v23  ;;  %v189_v45 = vmul.f32 0.14251846, %v181_v42  ;;  %v213_v46 = vmul.f32 0.1513313, %v205_v43  ;;  %v286_v49 = vmul.f32 0.14251846, %v278_v36 }
  0x52   : > { %v246_v48 = vadd.f32 %v238_v34, %v222_v39  ;;  %v229_v50 = vld [vmem:[#allocation2 + $0xb] sm:$0xff]  ;;  %v310_v57 = vmul.f32 0.12895603, %v302_v37  ;;  %v167_v59 = vld [vmem:[#allocation2 + $0x20] sm:$0xff]  ;;  %v232_v26 = vld [vmem:[#allocation2 + $0x33] sm:$0xff] }
  0x53   : > { %v268_v38 = vadd.f32 %v260_v20, %v244_v31  ;;  %v253_v51 = vld [vmem:[#allocation2 + $0xc] sm:$0xff]  ;;  %v197_v52 = vadd.f32 %v189_v45, %v173_v44  ;;  %v237_v53 = vmul.f32 0.1543884, %v229_v50  ;;  %v183_v60 = vld [vmem:[#allocation2 + $0x21] sm:$0xff]  ;;  %v175_v63 = vmul.f32 0.12895603, %v167_v59 }
  0x54   : > { %v277_v54 = vld [vmem:[#allocation2 + $0xd] sm:$0xff]  ;;  %v270_v56 = vadd.f32 %v262_v40, %v246_v48  ;;  %v261_v58 = vmul.f32 0.1513313, %v253_v51  ;;  %v191_v0 = vmul.f32 0.14251846, %v183_v60  ;;  %v207_v3 = vld [vmem:[#allocation2 + $0x22] sm:$0xff] }
  0x55   : > { %v292_v47 = vadd.f32 %v284_v27, %v268_v38  ;;  %v221_v61 = vadd.f32 %v213_v46, %v197_v52  ;;  %v301_v62 = vld [vmem:[#allocation2 + $0xe] sm:$0xff]  ;;  %v285_v2 = vmul.f32 0.14251846, %v277_v54  ;;  %v231_v4 = vld [vmem:[#allocation2 + $0x23] sm:$0xff]  ;;  %v215_v8 = vmul.f32 0.1513313, %v207_v3 }
  0x56   : > { %v294_v1 = vadd.f32 %v286_v49, %v270_v56  ;;  %v255_v5 = vld [vmem:[#allocation2 + $0x24] sm:$0xff]  ;;  %v199_v7 = vadd.f32 %v191_v0, %v175_v63  ;;  %v239_v9 = vmul.f32 0.1543884, %v231_v4  ;;  %v309_v11 = vmul.f32 0.12895603, %v301_v62  ;;  %v168_v17 = vld [vmem:[#allocation2 + $0x30] sm:$0xff] }
  0x57   : > { %v316_v55 = vadd.f32 %v308_v35, %v292_v47  ;;  %v245_v6 = vadd.f32 %v237_v53, %v221_v61  ;;  %v279_v12 = vld [vmem:[#allocation2 + $0x25] sm:$0xff]  ;;  %v263_v16 = vmul.f32 0.1513313, %v255_v5  ;;  %v184_v18 = vld [vmem:[#allocation2 + $0x31] sm:$0xff]  ;;  %v176_v20 = vmul.f32 0.12895603, %v168_v17 }
  0x58   : > { %v318_v10 = vadd.f32 %v310_v57, %v294_v1  ;;  %v303_v13 = vld [vmem:[#allocation2 + $0x26] sm:$0xff]  ;;  %v223_v15 = vadd.f32 %v215_v8, %v199_v7  ;;  %v208_v19 = vld [vmem:[#allocation2 + $0x32] sm:$0xff]  ;;  %v192_v21 = vmul.f32 0.14251846, %v184_v18  ;;  %v287_v25 = vmul.f32 0.14251846, %v279_v12 }
  0x59   : > { %350 = vrot.lane.b32.xlu0 %v316_v55, %s919_s17  ;;  %v269_v14 = vadd.f32 %v261_v58, %v245_v6  ;;  %v216_v22 = vmul.f32 0.1513313, %v208_v19  ;;  %v256_v27 = vld [vmem:[#allocation2 + $0x34] sm:$0xff]  ;;  %v240_v29 = vmul.f32 0.1543884, %v232_v26  ;;  %v257_v45 = vld [vmem:[#allocation2 + $0x3c] sm:$0xff] }
  0x5a   : > { %354 = vrot.lane.b32.xlu1 %v318_v10, %s919_s17  ;;  %v247_v24 = vadd.f32 %v239_v9, %v223_v15  ;;  %v200_v28 = vadd.f32 %v192_v21, %v176_v20  ;;  %v280_v30 = vld [vmem:[#allocation2 + $0x35] sm:$0xff]  ;;  %v311_v33 = vmul.f32 0.12895603, %v303_v13  ;;  %v264_v34 = vmul.f32 0.1513313, %v256_v27  ;;  %v281_v52 = vld [vmem:[#allocation2 + $0x3d] sm:$0xff] }
  0x5b   : > { %v293_v23 = vadd.f32 %v285_v2, %v269_v14  ;;  %v169_v35 = vld [vmem:[#allocation2 + $0x38] sm:$0xff]  ;;  %v288_v42 = vmul.f32 0.14251846, %v280_v30  ;;  %v265_v56 = vmul.f32 0.1513313, %v257_v45  ;;  %v170_v57 = vld [vmem:[#allocation2 + $0x48] sm:$0xff] }
  0x5c   : > { %v271_v32 = vadd.f32 %v263_v16, %v247_v24  ;;  %v185_v36 = vld [vmem:[#allocation2 + $0x39] sm:$0xff]  ;;  %v224_v37 = vadd.f32 %v216_v22, %v200_v28  ;;  %v177_v39 = vmul.f32 0.12895603, %v169_v35  ;;  %v186_v58 = vld [vmem:[#allocation2 + $0x49] sm:$0xff]  ;;  %v178_v60 = vmul.f32 0.12895603, %v170_v57 }
  0x5d   : > { %v317_v31 = vadd.f32 %v309_v11, %v293_v23  ;;  %v304_v38 = vld [vmem:[#allocation2 + $0x36] sm:$0xff]  ;;  %v193_v40 = vmul.f32 0.14251846, %v185_v36  ;;  %v305_v53 = vld [vmem:[#allocation2 + $0x3e] sm:$0xff]  ;;  %v210_v59 = vld [vmem:[#allocation2 + $0x4a] sm:$0xff] }
  0x5e   : > { %v295_v41 = vadd.f32 %v287_v25, %v271_v32  ;;  %v209_v43 = vld [vmem:[#allocation2 + $0x3a] sm:$0xff]  ;;  %v248_v46 = vadd.f32 %v240_v29, %v224_v37  ;;  %v312_v51 = vmul.f32 0.12895603, %v304_v38  ;;  %v194_v61 = vmul.f32 0.14251846, %v186_v58  ;;  %v234_v2 = vld [vmem:[#allocation2 + $0x4b] sm:$0xff] }
  0x5f   : > { %352 = vrot.lane.b32.xlu0 %v317_v31, %s919_s17  ;;  %v233_v44 = vld [vmem:[#allocation2 + $0x3b] sm:$0xff]  ;;  %v201_v47 = vadd.f32 %v193_v40, %v177_v39  ;;  %v217_v48 = vmul.f32 0.1513313, %v209_v43  ;;  %v218_v62 = vmul.f32 0.1513313, %v210_v59  ;;  %v258_v3 = vld [vmem:[#allocation2 + $0x4c] sm:$0xff] }
  0x60   : > { %v241_v49 = vmul.f32 0.1543884, %v233_v44  ;;  %v319_v50 = vadd.f32 %v311_v33, %v295_v41  ;;  %v272_v54 = vadd.f32 %v264_v34, %v248_v46  ;;  %v289_v1 = vmul.f32 0.14251846, %v281_v52  ;;  %v282_v6 = vld [vmem:[#allocation2 + $0x4d] sm:$0xff]  ;;  %v283_v27 = vld [vmem:[#allocation2 + $0x55] sm:$0xff] }
  0x61   : > { %v225_v55 = vadd.f32 %v217_v48, %v201_v47  ;;  %v202_v4 = vadd.f32 %v194_v61, %v178_v60  ;;  %v242_v5 = vmul.f32 0.1543884, %v234_v2  ;;  %v313_v9 = vmul.f32 0.12895603, %v305_v53  ;;  %v171_v11 = vld [vmem:[#allocation2 + $0x50] sm:$0xff] }
  0x62   : > { %356 = vrot.lane.b32.xlu1 %v319_v50, %s919_s17  ;;  %v296_v63 = vadd.f32 %v288_v42, %v272_v54  ;;  %v266_v10 = vmul.f32 0.1513313, %v258_v3  ;;  %v187_v12 = vld [vmem:[#allocation2 + $0x51] sm:$0xff]  ;;  %v179_v15 = vmul.f32 0.12895603, %v171_v11 }
  0x63   : > { %v249_v0 = vadd.f32 %v241_v49, %v225_v55  ;;  %v226_v13 = vadd.f32 %v218_v62, %v202_v4  ;;  %v306_v14 = vld [vmem:[#allocation2 + $0x4e] sm:$0xff]  ;;  %v195_v16 = vmul.f32 0.14251846, %v187_v12  ;;  %v290_v18 = vmul.f32 0.14251846, %v282_v6  ;;  %v307_v32 = vld [vmem:[#allocation2 + $0x56] sm:$0xff] }
  0x64   : > { %v320_v7 = vadd.f32 %v312_v51, %v296_v63  ;;  %v211_v19 = vld [vmem:[#allocation2 + $0x52] sm:$0xff]  ;;  %v314_v29 = vmul.f32 0.12895603, %v306_v14  ;;  %v291_v35 = vmul.f32 0.14251846, %v283_v27 }
  0x65   : > { %v273_v8 = vadd.f32 %v265_v56, %v249_v0  ;;  %v235_v20 = vld [vmem:[#allocation2 + $0x53] sm:$0xff]  ;;  %v250_v22 = vadd.f32 %v242_v5, %v226_v13  ;;  %v203_v23 = vadd.f32 %v195_v16, %v179_v15  ;;  %v219_v24 = vmul.f32 0.1513313, %v211_v19 }
  0x66   : > { %358 = vrot.lane.b32.xlu0 %v320_v7, %s919_s17  ;;  %v259_v21 = vld [vmem:[#allocation2 + $0x54] sm:$0xff]  ;;  %v243_v25 = vmul.f32 0.1543884, %v235_v20  ;;  %v315_v38 = vmul.f32 0.12895603, %v307_v32 }
  0x67   : > { %v297_v17 = vadd.f32 %v289_v1, %v273_v8  ;;  %v274_v28 = vadd.f32 %v266_v10, %v250_v22  ;;  %v227_v30 = vadd.f32 %v219_v24, %v203_v23  ;;  %v267_v31 = vmul.f32 0.1513313, %v259_v21 }
  0x69   : > { %v321_v26 = vadd.f32 %v313_v9, %v297_v17  ;;  %v298_v33 = vadd.f32 %v290_v18, %v274_v28  ;;  %v251_v34 = vadd.f32 %v243_v25, %v227_v30 }
  0x6b   : > { %360 = vrot.lane.b32.xlu1 %v321_v26, %s919_s17  ;;  %v322_v36 = vadd.f32 %v314_v29, %v298_v33  ;;  %v275_v37 = vadd.f32 %v267_v31, %v251_v34 }
  0x6d   : > { %362 = vrot.lane.b32.xlu0 %v322_v36, %s919_s17  ;;  %v299_v39 = vadd.f32 %v291_v35, %v275_v37 }
  0x6f   : > { %v323_v40 = vadd.f32 %v315_v38, %v299_v39 }
  0x71   : > { %364 = vrot.lane.b32.xlu1 %v323_v40, %s919_s17 }
  0xcb   : > { %v351_v41 = vpop.permute.xlu0 %350 }
  0xcc   : > { %375 = vst.msk [vmem:[#allocation3] sm:$0xff] %vm374_vm4, %v351_v41  ;;  %v355_v42 = vpop.permute.xlu1 %354 }
  0xcd   : > { %377 = vst.msk [vmem:[#allocation3 + $0x10] sm:$0xff] %vm374_vm4, %v355_v42 }
  0xd1   : > { %v353_v44 = vpop.permute.xlu0 %352 }
  0xd2   : > { %376 = vst.msk [vmem:[#allocation3 + $0x8] sm:$0xff] %vm374_vm4, %v353_v44 }
  0xd3   : > { %v1082_v43 = vld [vmem:[#allocation3] sm:$0xff] }
  0xd4   : > { %v1085_v45 = vmul.f32 0.14251846, %v1082_v43  ;;  %v1090_v46 = vld [vmem:[#allocation3 + $0x10] sm:$0xff]  ;;  %v357_v47 = vpop.permute.xlu1 %356  ;;  %v447_v1 = vmul.f32 0.1513313, %v1082_v43 }
  0xd5   : > { %v1093_v48 = vmul.f32 0.14251846, %v1090_v46  ;;  %378 = vst.msk [vmem:[#allocation3 + $0x18] sm:$0xff] %vm374_vm4, %v357_v47  ;;  %v449_v3 = vmul.f32 0.1513313, %v1090_v46 }
  0xd6   : > { %415 = vrot.lane.b32.xlu0 %v1085_v45, %s920_s25  ;;  %v495_v9 = vmul.f32 0.1543884, %v1082_v43  ;;  %v497_v11 = vmul.f32 0.1543884, %v1090_v46  ;;  %v391_v17 = vmul.f32 0.12895603, %v1082_v43 }
  0xd7   : > { %v393_v19 = vmul.f32 0.12895603, %v1090_v46 }
  0xd8   : > { %v359_v50 = vpop.permute.xlu0 %358 }
  0xd9   : > { %v1098_v49 = vld [vmem:[#allocation3 + $0x8] sm:$0xff]  ;;  %379 = vst.msk [vmem:[#allocation3 + $0x20] sm:$0xff] %vm374_vm4, %v359_v50 }
  0xda   : > { %419 = vrot.lane.b32.xlu0 %v1093_v48, %s920_s25  ;;  %v1101_v51 = vmul.f32 0.14251846, %v1098_v49  ;;  %v448_v2 = vmul.f32 0.1513313, %v1098_v49  ;;  %v496_v10 = vmul.f32 0.1543884, %v1098_v49 }
  0xdb   : > { %v392_v18 = vmul.f32 0.12895603, %v1098_v49 }
  0xdc   : > { %417 = vrot.lane.b32.xlu1 %v1101_v51, %s920_s25  ;;  %v1106_v52 = vld [vmem:[#allocation3 + $0x18] sm:$0xff] }
  0xdd   : > { %v361_v53 = vpop.permute.xlu1 %360  ;;  %v1109_v54 = vmul.f32 0.14251846, %v1106_v52  ;;  %v450_v4 = vmul.f32 0.1513313, %v1106_v52  ;;  %v498_v12 = vmul.f32 0.1543884, %v1106_v52 }
  0xde   : > { %380 = vst.msk [vmem:[#allocation3 + $0x28] sm:$0xff] %vm374_vm4, %v361_v53  ;;  %v394_v20 = vmul.f32 0.12895603, %v1106_v52 }
  0xdf   : > { %v363_v56 = vpop.permute.xlu0 %362 }
  0xe0   : > { %421 = vrot.lane.b32.xlu1 %v1109_v54, %s920_s25  ;;  %v1114_v55 = vld [vmem:[#allocation3 + $0x20] sm:$0xff]  ;;  %381 = vst.msk [vmem:[#allocation3 + $0x30] sm:$0xff] %vm374_vm4, %v363_v56 }
  0xe1   : > { %v403_v57 = vmul.f32 0.14251846, %v1114_v55  ;;  %v451_v5 = vmul.f32 0.1513313, %v1114_v55  ;;  %v499_v13 = vmul.f32 0.1543884, %v1114_v55 }
  0xe2   : > { %v395_v21 = vmul.f32 0.12895603, %v1114_v55 }
  0xe3   : > { %423 = vrot.lane.b32.xlu0 %v403_v57, %s920_s25  ;;  %v365_v59 = vpop.permute.xlu1 %364 }
  0xe4   : > { %382 = vst.msk [vmem:[#allocation3 + $0x38] sm:$0xff] %vm374_vm4, %v365_v59 }
  0xe5   : > { %v1119_v58 = vld [vmem:[#allocation3 + $0x28] sm:$0xff] }
  0xe6   : > { %v404_v60 = vmul.f32 0.14251846, %v1119_v58  ;;  %v452_v6 = vmul.f32 0.1513313, %v1119_v58  ;;  %v500_v14 = vmul.f32 0.1543884, %v1119_v58 }
  0xe7   : > { %v1124_v61 = vld [vmem:[#allocation3 + $0x30] sm:$0xff]  ;;  %v396_v22 = vmul.f32 0.12895603, %v1119_v58 }
  0xe8   : > { %425 = vrot.lane.b32.xlu1 %v404_v60, %s920_s25  ;;  %v405_v62 = vmul.f32 0.14251846, %v1124_v61  ;;  %v453_v7 = vmul.f32 0.1513313, %v1124_v61  ;;  %v501_v15 = vmul.f32 0.1543884, %v1124_v61 }
  0xe9   : > { %v397_v23 = vmul.f32 0.12895603, %v1124_v61 }
  0xea   : > { %427 = vrot.lane.b32.xlu0 %v405_v62, %s920_s25 }
  0xeb   : > { %v1128_v63 = vld [vmem:[#allocation3 + $0x38] sm:$0xff] }
  0xec   : > { %v406_v0 = vmul.f32 0.14251846, %v1128_v63  ;;  %v454_v8 = vmul.f32 0.1513313, %v1128_v63  ;;  %v502_v16 = vmul.f32 0.1543884, %v1128_v63 }
  0xed   : > { %v398_v24 = vmul.f32 0.12895603, %v1128_v63 }
  0xee   : > { %429 = vrot.lane.b32.xlu1 %v406_v0, %s920_s25  ;;  %463 = vrot.lane.b32.xlu0 %v447_v1, %s921_s27 }
  0xf2   : > { %465 = vrot.lane.b32.xlu1 %v448_v2, %s921_s27  ;;  %467 = vrot.lane.b32.xlu0 %v449_v3, %s921_s27 }
  0xf6   : > { %469 = vrot.lane.b32.xlu1 %v450_v4, %s921_s27  ;;  %471 = vrot.lane.b32.xlu0 %v451_v5, %s921_s27 }
  0xfa   : > { %473 = vrot.lane.b32.xlu1 %v452_v6, %s921_s27  ;;  %475 = vrot.lane.b32.xlu0 %v453_v7, %s921_s27 }
  0xfe   : > { %477 = vrot.lane.b32.xlu1 %v454_v8, %s921_s27  ;;  %511 = vrot.lane.b32.xlu0 %v495_v9, %s922_s28 }
 0x102   : > { %513 = vrot.lane.b32.xlu1 %v496_v10, %s922_s28  ;;  %515 = vrot.lane.b32.xlu0 %v497_v11, %s922_s28 }
 0x106   : > { %517 = vrot.lane.b32.xlu1 %v498_v12, %s922_s28  ;;  %519 = vrot.lane.b32.xlu0 %v499_v13, %s922_s28 }
 0x10a   : > { %521 = vrot.lane.b32.xlu1 %v500_v14, %s922_s28  ;;  %523 = vrot.lane.b32.xlu0 %v501_v15, %s922_s28 }
 0x10e   : > { %525 = vrot.lane.b32.xlu1 %v502_v16, %s922_s28  ;;  %543 = vrot.lane.b32.xlu0 %v447_v1, %s923_s29 }
 0x112   : > { %545 = vrot.lane.b32.xlu1 %v448_v2, %s923_s29  ;;  %547 = vrot.lane.b32.xlu0 %v449_v3, %s923_s29 }
 0x116   : > { %549 = vrot.lane.b32.xlu1 %v450_v4, %s923_s29  ;;  %551 = vrot.lane.b32.xlu0 %v451_v5, %s923_s29 }
 0x11a   : > { %553 = vrot.lane.b32.xlu1 %v452_v6, %s923_s29  ;;  %555 = vrot.lane.b32.xlu0 %v453_v7, %s923_s29 }
 0x11e   : > { %557 = vrot.lane.b32.xlu1 %v454_v8, %s923_s29  ;;  %575 = vrot.lane.b32.xlu0 %v1085_v45, %s924_s2 }
 0x122   : > { %577 = vrot.lane.b32.xlu1 %v1101_v51, %s924_s2  ;;  %579 = vrot.lane.b32.xlu0 %v1093_v48, %s924_s2 }
 0x126   : > { %581 = vrot.lane.b32.xlu1 %v1109_v54, %s924_s2  ;;  %583 = vrot.lane.b32.xlu0 %v403_v57, %s924_s2 }
 0x12a   : > { %585 = vrot.lane.b32.xlu1 %v404_v60, %s924_s2  ;;  %587 = vrot.lane.b32.xlu0 %v405_v62, %s924_s2 }
 0x12e   : > { %589 = vrot.lane.b32.xlu1 %v406_v0, %s924_s2  ;;  %615 = vrot.lane.b32.xlu0 %v391_v17, %s925_s3 }
 0x132   : > { %617 = vrot.lane.b32.xlu1 %v392_v18, %s925_s3  ;;  %619 = vrot.lane.b32.xlu0 %v393_v19, %s925_s3 }
 0x136   : > { %621 = vrot.lane.b32.xlu1 %v394_v20, %s925_s3  ;;  %623 = vrot.lane.b32.xlu0 %v395_v21, %s925_s3 }
 0x13a   : > { %625 = vrot.lane.b32.xlu1 %v396_v22, %s925_s3  ;;  %627 = vrot.lane.b32.xlu0 %v397_v23, %s925_s3 }
 0x13e   : > { %629 = vrot.lane.b32.xlu1 %v398_v24, %s925_s3 }
 0x148   : > { %v416_v25 = vpop.permute.xlu0 %415 }
 0x149   : > { %v439_v26 = vadd.f32 %v416_v25, %v391_v17 }
 0x14c   : > { %v420_v27 = vpop.permute.xlu0 %419 }
 0x14d   : > { %v441_v28 = vadd.f32 %v420_v27, %v393_v19 }
 0x14e   : > { %v418_v29 = vpop.permute.xlu1 %417 }
 0x14f   : > { %v440_v30 = vadd.f32 %v418_v29, %v392_v18 }
 0x152   : > { %v422_v31 = vpop.permute.xlu1 %421 }
 0x153   : > { %v442_v32 = vadd.f32 %v422_v31, %v394_v20 }
 0x155   : > { %v424_v33 = vpop.permute.xlu0 %423 }
 0x156   : > { %v443_v34 = vadd.f32 %v424_v33, %v395_v21 }
 0x15a   : > { %v426_v35 = vpop.permute.xlu1 %425 }
 0x15b   : > { %v444_v36 = vadd.f32 %v426_v35, %v396_v22 }
 0x15c   : > { %v428_v37 = vpop.permute.xlu0 %427 }
 0x15d   : > { %v445_v38 = vadd.f32 %v428_v37, %v397_v23 }
 0x160   : > { %v430_v39 = vpop.permute.xlu1 %429  ;;  %v464_v40 = vpop.permute.xlu0 %463 }
 0x161   : > { %v1160_v41 = vadd.f32 %v430_v39, %v398_v24  ;;  %v487_v6 = vadd.f32 %v464_v40, %v439_v26 }
 0x164   : > { %v466_v42 = vpop.permute.xlu1 %465  ;;  %v468_v43 = vpop.permute.xlu0 %467 }
 0x165   : > { %v488_v10 = vadd.f32 %v466_v42, %v440_v30  ;;  %v489_v11 = vadd.f32 %v468_v43, %v441_v28 }
 0x168   : > { %v470_v44 = vpop.permute.xlu1 %469  ;;  %v472_v45 = vpop.permute.xlu0 %471 }
 0x169   : > { %v490_v16 = vadd.f32 %v470_v44, %v442_v32  ;;  %v491_v19 = vadd.f32 %v472_v45, %v443_v34 }
 0x16c   : > { %v474_v46 = vpop.permute.xlu1 %473  ;;  %v476_v47 = vpop.permute.xlu0 %475 }
 0x16d   : > { %v492_v27 = vadd.f32 %v474_v46, %v444_v36  ;;  %v493_v28 = vadd.f32 %v476_v47, %v445_v38 }
 0x170   : > { %v478_v48 = vpop.permute.xlu1 %477  ;;  %v512_v49 = vpop.permute.xlu0 %511 }
 0x171   : > { %v535_v7 = vadd.f32 %v512_v49, %v487_v6  ;;  %v494_v42 = vadd.f32 %v478_v48, %v1160_v41 }
 0x174   : > { %v514_v50 = vpop.permute.xlu1 %513  ;;  %v516_v51 = vpop.permute.xlu0 %515 }
 0x175   : > { %v536_v13 = vadd.f32 %v514_v50, %v488_v10  ;;  %v537_v14 = vadd.f32 %v516_v51, %v489_v11 }
 0x178   : > { %v518_v52 = vpop.permute.xlu1 %517  ;;  %v520_v53 = vpop.permute.xlu0 %519 }
 0x179   : > { %v538_v23 = vadd.f32 %v518_v52, %v490_v16  ;;  %v539_v24 = vadd.f32 %v520_v53, %v491_v19 }
 0x17c   : > { %v522_v54 = vpop.permute.xlu1 %521  ;;  %v524_v55 = vpop.permute.xlu0 %523 }
 0x17d   : > { %v540_v35 = vadd.f32 %v522_v54, %v492_v27  ;;  %v541_v37 = vadd.f32 %v524_v55, %v493_v28 }
 0x180   : > { %v526_v56 = vpop.permute.xlu1 %525  ;;  %v544_v57 = vpop.permute.xlu0 %543 }
 0x181   : > { %v567_v12 = vadd.f32 %v544_v57, %v535_v7  ;;  %v542_v47 = vadd.f32 %v526_v56, %v494_v42 }
 0x184   : > { %v546_v58 = vpop.permute.xlu1 %545  ;;  %v548_v59 = vpop.permute.xlu0 %547 }
 0x185   : > { %v568_v20 = vadd.f32 %v546_v58, %v536_v13  ;;  %v569_v21 = vadd.f32 %v548_v59, %v537_v14 }
 0x188   : > { %v550_v60 = vpop.permute.xlu1 %549  ;;  %v552_v61 = vpop.permute.xlu0 %551 }
 0x189   : > { %v570_v31 = vadd.f32 %v550_v60, %v538_v23  ;;  %v571_v32 = vadd.f32 %v552_v61, %v539_v24 }
 0x18c   : > { %v554_v62 = vpop.permute.xlu1 %553  ;;  %v556_v63 = vpop.permute.xlu0 %555 }
 0x18d   : > { %v572_v43 = vadd.f32 %v554_v62, %v540_v35  ;;  %v573_v44 = vadd.f32 %v556_v63, %v541_v37 }
 0x190   : > { %v558_v0 = vpop.permute.xlu1 %557  ;;  %v576_v1 = vpop.permute.xlu0 %575 }
 0x191   : > { %v599_v15 = vadd.f32 %v576_v1, %v567_v12  ;;  %v574_v51 = vadd.f32 %v558_v0, %v542_v47 }
 0x194   : > { %v578_v2 = vpop.permute.xlu1 %577  ;;  %v580_v3 = vpop.permute.xlu0 %579 }
 0x195   : > { %v600_v25 = vadd.f32 %v578_v2, %v568_v20  ;;  %v601_v26 = vadd.f32 %v580_v3, %v569_v21 }
 0x198   : > { %v582_v4 = vpop.permute.xlu1 %581  ;;  %v584_v5 = vpop.permute.xlu0 %583 }
 0x199   : > { %v602_v39 = vadd.f32 %v582_v4, %v570_v31  ;;  %v603_v40 = vadd.f32 %v584_v5, %v571_v32 }
 0x19c   : > { %v586_v8 = vpop.permute.xlu1 %585  ;;  %v588_v9 = vpop.permute.xlu0 %587 }
 0x19d   : > { %v604_v49 = vadd.f32 %v586_v8, %v572_v43  ;;  %v605_v50 = vadd.f32 %v588_v9, %v573_v44 }
 0x1a0   : > { %v590_v17 = vpop.permute.xlu1 %589  ;;  %v616_v18 = vpop.permute.xlu0 %615 }
 0x1a1   : > { %v639_v22 = vadd.f32 %v616_v18, %v599_v15  ;;  %v606_v54 = vadd.f32 %v590_v17, %v574_v51 }
 0x1a3   : > { %647 = vst.msk [vmem:[%s1164_s4] sm:$0xff] %vm155_vm3, %v639_v22 }
 0x1a4   : > { %v618_v29 = vpop.permute.xlu1 %617  ;;  %v620_v30 = vpop.permute.xlu0 %619 }
 0x1a5   : > { %v640_v33 = vadd.f32 %v618_v29, %v600_v25  ;;  %v641_v34 = vadd.f32 %v620_v30, %v601_v26 }
 0x1a7   : > { %648 = vst.msk [vmem:[%s1164_s4 + $0x8] sm:$0xff] %vm155_vm3, %v640_v33  ;;  %649 = vst.msk [vmem:[%s1164_s4 + $0x10] sm:$0xff] %vm155_vm3, %v641_v34 }
 0x1a8   : > { %v622_v36 = vpop.permute.xlu1 %621  ;;  %v624_v38 = vpop.permute.xlu0 %623 }
 0x1a9   : > { %v642_v45 = vadd.f32 %v622_v36, %v602_v39  ;;  %v643_v46 = vadd.f32 %v624_v38, %v603_v40 }
 0x1ab   : > { %650 = vst.msk [vmem:[%s1164_s4 + $0x18] sm:$0xff] %vm155_vm3, %v642_v45  ;;  %651 = vst.msk [vmem:[%s1164_s4 + $0x20] sm:$0xff] %vm155_vm3, %v643_v46 }
 0x1ac   : > { %v626_v41 = vpop.permute.xlu1 %625  ;;  %v628_v48 = vpop.permute.xlu0 %627 }
 0x1ad   : > { %v644_v52 = vadd.f32 %v626_v41, %v604_v49  ;;  %v645_v53 = vadd.f32 %v628_v48, %v605_v50 }
 0x1af   : > { %652 = vst.msk [vmem:[%s1164_s4 + $0x28] sm:$0xff] %vm155_vm3, %v644_v52  ;;  %653 = vst.msk [vmem:[%s1164_s4 + $0x30] sm:$0xff] %vm155_vm3, %v645_v53 }
 0x1b0   : > { %v630_v55 = vpop.permute.xlu1 %629 }
 0x1b1   : > { %v646_v56 = vadd.f32 %v630_v55, %v606_v54 }
 0x1b3   : > { %654 = vst.msk [vmem:[%s1164_s4 + $0x38] sm:$0xff] %vm155_vm3, %v646_v56 }
 0x1b4   : > { %862 = shalt.err (!%p859_p10)
}
 0x1b5   : > { %s863_s26 = scalar_lea.hbm %s1186_s16, 1024  ;;  %s867_s25 = scalar_lea.hbm %s1234_s1, 2048 }
 0x1b6   : > { %p864_p0 = scmp.ne.s32.totalorder %s1186_s16, %s863_s26  ;;  %p868_p1 = scmp.lt.s32.totalorder %s1186_s16, %s1234_s1 }
 0x1b7   : > { %p869_p3 = scmp.lt.s32.totalorder %s867_s25, %s863_s26 }
 0x1b8   : > { %p865_p2 = pnand %p864_p0, %p1243_p12 }
 0x1b9   : > { %p870_p6 = por %p869_p3, %p868_p1 }
 0x1ba   : > { %p866_p9 = pneg %p865_p2 }
 0x1bc   : > { %p871_p11 = pnand %p870_p6, %p866_p9 }
 0x1be   : > { %874 = shalt.err (!%p871_p11)
}
 0x1bf   : > { %s927_s29 = smov 128   ;;  %s928_s2 = smov 8  }
 0x1c0   : > { %765 = dma.vmem_to_hbm [thread:$0]  (%p1243_p12), %s1188_s11, 1024, %s1186_s16, %s656_s10, %s927_s29, %s927_s29, %s928_s2  }
 0x1c1 PF: > { %s685_s3 = sand.u32 1, %s901_s6   ;;  %p1244_p13 = scmp.ne.s32.totalorder %s1240_s19, 0 }
 0x1c2   : > { %p1245_p4 = scmp.ge.s32.totalorder %s913_s9, 2  ;;  %s686_s4 = scalar_lea.sflag [#allocation6], %s685_s3 }
 0x1c4   : > { %p772_p5 = pnand %p1245_p4, %p1244_p13 }
 0x1c6   : > { %p773_p7 = pneg %p772_p5 }
 0x1c8   : > { %896 = dma.done.wait (%p773_p7), %s686_s4, 1024  }
 0x1c9   : > { %898 = vsyncadd (%p773_p7), %s686_s4, 4294966272  ;;  %p14_p8 = scmp.ge.s32.totalorder %s964_s12, 4   ;;  %s1246_s6 = smov %s905_s7 }
 0x1ca   : > { %s1247_s7 = smov %s909_s8  ;;  %s1248_s8 = smov %s976_s15 }
 0x1cb   : > { %s1249_s9 = smov %s964_s12  ;;  %16 = sbr.rel (!%p14_p8) target bundleno = 5 (0x5), region = 69 }
 0x1d0   :  { %691 = vsyncpa [#allocation5], 1 }
 0x1d1   :  { %693 = vsyncpa [#allocation5 + $0x1], 1 }
 0x1d2   :  { %694 = vsyncpa [#allocation6], 1 }
 0x1d3   :  { %696 = vsyncpa [#allocation6 + $0x1], 1 }

</bundles_post_ra>
